<compile_context>
chip_gen: v6e
topology: v6e:2x2x1
jax: 0.10.0
libtpu: 0.0.40
codegen_flags: <defaults>
</compile_context>

<pallas_src>
import numpy as np
import jax
import jax.numpy as jnp
from jax.experimental import pallas as pl
from jax.experimental.pallas import tpu as pltpu

HLS = 16        # hidden layer size (matches Net default)
A_PAD = 8       # per-candidate padded action width (>= num_actions)
N_SPLIT = 2     # candidate-halves grid (keeps v7x's second TensorCore busy)


def mlp_pop_kernel(x_ref, w1_ref, w2_ref, w3_ref, b12_ref, b3_ref, o_ref):
    """One grid step = one candidate-half; fused 3-layer block-diag MLP."""
    x = x_ref[...]            # (B, num_agents)              shared across steps
    w1 = w1_ref[0]            # (num_agents, P_half*HLS)     concat over candidates
    w2 = w2_ref[0]            # (P_half*HLS, P_half*HLS)     block-diagonal
    w3 = w3_ref[0]            # (P_half*HLS, P_half*A_PAD)   block-diagonal (zero-padded)
    b12 = b12_ref[0]          # (2, P_half*HLS)              rows: b1, b2 (lane-dense)
    b3 = b3_ref[0]            # (1, P_half*A_PAD)            lane-dense

    a = jnp.dot(x, w1, preferred_element_type=jnp.float32) + b12[0:1, :]
    a = jnp.maximum(a, 0.0)
    a = jnp.dot(a, w2, preferred_element_type=jnp.float32) + b12[1:2, :]
    a = jnp.maximum(a, 0.0)
    o = jnp.dot(a, w3, preferred_element_type=jnp.float32) + b3
    o_ref[0] = o.astype(o_ref.dtype)


def net_forward_population(s, packed_params):
    """Evaluate the whole ES population on one state batch in one pallas_call.

    s:             (B, num_agents) float32, strictly positive.
    packed_params: output of pack_population -> (w1p, w2p, w3p, b12p, b3p) with
                   shapes (S, na, H), (S, H, H), (S, H, N), (S, 2, H), (S, 1, N)
                   where S = N_SPLIT, H = P_half*HLS, N = P_half*A_PAD.
    returns:       (S, B, N) float32, candidates packed along lanes
                   (consumers index lazily; see unpack_actions).
    """
    w1p, w2p, w3p, b12p, b3p = packed_params
    n_split, num_agents, hh = w1p.shape
    nh = w3p.shape[-1]
    B = s.shape[0]

    return pl.pallas_call(
        mlp_pop_kernel,
        out_shape=jax.ShapeDtypeStruct((n_split, B, nh), jnp.float32),
        grid=(n_split,),
        in_specs=[
            pl.BlockSpec((B, num_agents), lambda h: (0, 0)),        # resident state
            pl.BlockSpec((1, num_agents, hh), lambda h: (h, 0, 0)),
            pl.BlockSpec((1, hh, hh), lambda h: (h, 0, 0)),
            pl.BlockSpec((1, hh, nh), lambda h: (h, 0, 0)),
            pl.BlockSpec((1, 2, hh), lambda h: (h, 0, 0)),
            pl.BlockSpec((1, 1, nh), lambda h: (h, 0, 0)),
        ],
        out_specs=pl.BlockSpec((1, B, nh), lambda h: (h, 0, 0)),
        compiler_params=pltpu.CompilerParams(
            dimension_semantics=("parallel",)),   # shards halves across v7x's 2 TCs
    )(s, w1p, w2p, w3p, b12p, b3p)


def unpack_actions(out_packed, num_actions, a_pad=A_PAD):
    """Test-only helper: (S, B, P_half*A_PAD) -> (P, B, num_actions)."""
    n_split, B, nh = out_packed.shape
    ph = nh // a_pad
    o = out_packed.reshape(n_split, B, ph, a_pad)[..., :num_actions]
    return jnp.transpose(o, (0, 2, 1, 3)).reshape(n_split * ph, B, num_actions)


def net_forward(s, single_params, num_agents, num_actions):
    """Single-candidate forward (population of 1, single grid step)."""
    packed = pack_population([single_params], num_agents, num_actions, n_split=1)
    out_packed = net_forward_population(s, packed)       # (1, B, A_PAD)
    return out_packed[0, :, :num_actions]


# ---------------- parameter construction (mirrors Net.xavier_init) ----------

def xavier_normal(key, fan_out, fan_in):
    # nn.init.xavier_normal_ on a (out, in) Linear weight
    std = jnp.sqrt(2.0 / (fan_in + fan_out))
    return std * jax.random.normal(key, (fan_out, fan_in), dtype=jnp.float32)


def init_single_params(key, num_agents, num_actions, hls=HLS):
    k1, k2, k3 = jax.random.split(key, 3)
    # PyTorch Linear weight is (out, in); pre-transpose to (in, out).
    w1 = xavier_normal(k1, hls, num_agents).T          # (num_agents, hls)
    w2 = xavier_normal(k2, hls, hls).T                 # (hls, hls)
    w3 = xavier_normal(k3, num_actions, hls).T         # (hls, num_actions)
    b1 = jnp.zeros((hls,), jnp.float32)
    b2 = jnp.zeros((hls,), jnp.float32)
    b3 = jnp.zeros((num_actions,), jnp.float32)
    return w1, b1, w2, b2, w3, b3


def pack_population(param_list, num_agents, num_actions,
                    hls=HLS, a_pad=A_PAD, n_split=N_SPLIT):
    """Pack P candidates into n_split block-diagonal weight slabs.

    fc1: concat over candidates along output dim; fc2/fc3: block-diagonal.
    fc3 / b3 are zero-padded per candidate from num_actions to a_pad lanes.
    """
    P = len(param_list)
    assert P % n_split == 0 and a_pad >= num_actions
    ph = P // n_split           # candidates per slab
    hh = ph * hls               # packed hidden width per slab
    nh = ph * a_pad             # packed action width per slab

    w1p = np.zeros((n_split, num_agents, hh), np.float32)
    w2p = np.zeros((n_split, hh, hh), np.float32)
    w3p = np.zeros((n_split, hh, nh), np.float32)
    b12p = np.zeros((n_split, 2, hh), np.float32)
    b3p = np.zeros((n_split, 1, nh), np.float32)

    for idx, (w1, b1, w2, b2, w3, b3) in enumerate(param_list):
        h, q = divmod(idx, ph)
        hs = slice(q * hls, (q + 1) * hls)
        w1p[h, :, hs] = np.asarray(w1)
        w2p[h, hs, hs] = np.asarray(w2)
        w3p[h, hs, q * a_pad:q * a_pad + num_actions] = np.asarray(w3)
        b12p[h, 0, hs] = np.asarray(b1)
        b12p[h, 1, hs] = np.asarray(b2)
        b3p[h, 0, q * a_pad:q * a_pad + num_actions] = np.asarray(b3)

    return tuple(jnp.asarray(a, jnp.float32) for a in (w1p, w2p, w3p, b12p, b3p))


def reference_forward(s, single_params):
    w1, b1, w2, b2, w3, b3 = single_params
    a = jnp.maximum(s @ w1 + b1, 0.0)
    a = jnp.maximum(a @ w2 + b2, 0.0)
    return a @ w3 + b3


if __name__ == "__main__":
    num_agents, num_actions, hls = 4, 3, HLS
    batch = 8            # multiple of 8 -> full sublane groups, no masking
    population = 16      # 16 cands x HLS 16 = 256 packed hidden, 128 per slab

    key = jax.random.PRNGKey(0)
    k_pop, k_x = jax.random.split(key)
    cand_keys = jax.random.split(k_pop, population)
    singles = [init_single_params(k, num_agents, num_actions, hls)
               for k in cand_keys]
    packed = pack_population(singles, num_agents, num_actions)

    # forward() asserts s > 0 in the torch module; build strictly positive input
    s = jnp.abs(jax.random.normal(k_x, (batch, num_agents), dtype=jnp.float32)) + 0.1

    out_packed = jax.block_until_ready(net_forward_population(s, packed))
    assert out_packed.shape == (N_SPLIT, batch, (population // N_SPLIT) * A_PAD)

    out = unpack_actions(out_packed, num_actions)        # (P, B, num_actions)
    for p in range(population):
        ref = reference_forward(s, singles[p])
        assert jnp.allclose(out[p], ref, atol=1e-5, rtol=1e-5), p

    # single-candidate path still available
    out0 = jax.block_until_ready(net_forward(s, singles[0], num_agents, num_actions))
    assert jnp.allclose(out0, reference_forward(s, singles[0]), atol=1e-5, rtol=1e-5)

    print("KERNEL_OK")
</pallas_src>

<mosaic_0001>
module attributes {stable_mosaic.version = 11 : i64} {
  func.func @mlp_pop_kernel(%arg0: i32, %arg1: memref<8x4xf32, #tpu.memory_space<vmem>>, %arg2: memref<1x4x128xf32, #tpu.memory_space<vmem>>, %arg3: memref<1x128x128xf32, #tpu.memory_space<vmem>>, %arg4: memref<1x128x64xf32, #tpu.memory_space<vmem>>, %arg5: memref<1x2x128xf32, #tpu.memory_space<vmem>>, %arg6: memref<1x1x64xf32, #tpu.memory_space<vmem>>, %arg7: memref<1x8x64xf32, #tpu.memory_space<vmem>>) attributes {dimension_semantics = [#tpu.dimension_semantics<parallel>], iteration_bounds = array<i64: 2>, scalar_prefetch = 0 : i64, scratch_operands = 0 : i64, tpu.core_type = #tpu.core_type<tc>, window_params = [{pipeline_mode = #tpu.pipeline_mode<synchronous>, transform_indices = @transform_0, window_bounds = array<i64: 8, 4>}, {transform_indices = @transform_1, window_bounds = array<i64: 1, 4, 128>}, {transform_indices = @transform_2, window_bounds = array<i64: 1, 128, 128>}, {transform_indices = @transform_3, window_bounds = array<i64: 1, 128, 64>}, {transform_indices = @transform_4, window_bounds = array<i64: 1, 2, 128>}, {transform_indices = @transform_5, window_bounds = array<i64: 1, 1, 64>}, {transform_indices = @transform_6, window_bounds = array<i64: 1, 8, 64>}]} {
    %c0 = arith.constant 0 : index
    %c0_0 = arith.constant 0 : index
    %0 = vector.load %arg1[%c0, %c0_0] : memref<8x4xf32, #tpu.memory_space<vmem>>, vector<8x4xf32>
    %c0_1 = arith.constant 0 : index
    %c0_2 = arith.constant 0 : index
    %c0_3 = arith.constant 0 : index
    %1 = vector.load %arg2[%c0_1, %c0_2, %c0_3] : memref<1x4x128xf32, #tpu.memory_space<vmem>>, vector<1x4x128xf32>
    %2 = vector.shape_cast %1 : vector<1x4x128xf32> to vector<4x128xf32>
    %c0_4 = arith.constant 0 : index
    %c0_5 = arith.constant 0 : index
    %c0_6 = arith.constant 0 : index
    %3 = vector.load %arg3[%c0_4, %c0_5, %c0_6] : memref<1x128x128xf32, #tpu.memory_space<vmem>>, vector<1x128x128xf32>
    %4 = vector.shape_cast %3 : vector<1x128x128xf32> to vector<128x128xf32>
    %c0_7 = arith.constant 0 : index
    %c0_8 = arith.constant 0 : index
    %c0_9 = arith.constant 0 : index
    %5 = vector.load %arg4[%c0_7, %c0_8, %c0_9] : memref<1x128x64xf32, #tpu.memory_space<vmem>>, vector<1x128x64xf32>
    %6 = vector.shape_cast %5 : vector<1x128x64xf32> to vector<128x64xf32>
    %c0_10 = arith.constant 0 : index
    %c0_11 = arith.constant 0 : index
    %c0_12 = arith.constant 0 : index
    %7 = vector.load %arg5[%c0_10, %c0_11, %c0_12] : memref<1x2x128xf32, #tpu.memory_space<vmem>>, vector<1x2x128xf32>
    %8 = vector.shape_cast %7 : vector<1x2x128xf32> to vector<2x128xf32>
    %c0_13 = arith.constant 0 : index
    %c0_14 = arith.constant 0 : index
    %c0_15 = arith.constant 0 : index
    %9 = vector.load %arg6[%c0_13, %c0_14, %c0_15] : memref<1x1x64xf32, #tpu.memory_space<vmem>>, vector<1x1x64xf32>
    %10 = vector.shape_cast %9 : vector<1x1x64xf32> to vector<1x64xf32>
    %cst = arith.constant dense<0.000000e+00> : vector<8x128xf32>
    %11 = tpu.matmul %0, %2, %cst {dimension_numbers = #tpu.dot_dimension_numbers<[1], [0], [0], [1], [0, 0, 1, 1], [], []>} : vector<8x4xf32>, vector<4x128xf32>, vector<8x128xf32> -> vector<8x128xf32>
    %12 = vector.extract_strided_slice %8 {offsets = [0, 0], sizes = [1, 128], strides = [1, 1]} : vector<2x128xf32> to vector<1x128xf32>
    %13 = vector.broadcast %12 : vector<1x128xf32> to vector<8x128xf32>
    %14 = arith.addf %11, %13 : vector<8x128xf32>
    %cst_16 = arith.constant 0.000000e+00 : f32
    %15 = vector.broadcast %cst_16 : f32 to vector<8x128xf32>
    %16 = arith.maximumf %14, %15 : vector<8x128xf32>
    %cst_17 = arith.constant dense<0.000000e+00> : vector<8x128xf32>
    %17 = tpu.matmul %16, %4, %cst_17 {dimension_numbers = #tpu.dot_dimension_numbers<[1], [0], [0], [1], [0, 0, 1, 1], [], []>} : vector<8x128xf32>, vector<128x128xf32>, vector<8x128xf32> -> vector<8x128xf32>
    %18 = vector.extract_strided_slice %8 {offsets = [1, 0], sizes = [1, 128], strides = [1, 1]} : vector<2x128xf32> to vector<1x128xf32>
    %19 = vector.broadcast %18 : vector<1x128xf32> to vector<8x128xf32>
    %20 = arith.addf %17, %19 : vector<8x128xf32>
    %cst_18 = arith.constant 0.000000e+00 : f32
    %21 = vector.broadcast %cst_18 : f32 to vector<8x128xf32>
    %22 = arith.maximumf %20, %21 : vector<8x128xf32>
    %cst_19 = arith.constant dense<0.000000e+00> : vector<8x64xf32>
    %23 = tpu.matmul %22, %6, %cst_19 {dimension_numbers = #tpu.dot_dimension_numbers<[1], [0], [0], [1], [0, 0, 1, 1], [], []>} : vector<8x128xf32>, vector<128x64xf32>, vector<8x64xf32> -> vector<8x64xf32>
    %24 = vector.broadcast %10 : vector<1x64xf32> to vector<8x64xf32>
    %25 = arith.addf %23, %24 : vector<8x64xf32>
    %c0_20 = arith.constant 0 : index
    %c0_21 = arith.constant 0 : index
    %c0_22 = arith.constant 0 : index
    %26 = vector.load %arg7[%c0_20, %c0_21, %c0_22] : memref<1x8x64xf32, #tpu.memory_space<vmem>>, vector<1x8x64xf32>
    %27 = vector.shape_cast %26 : vector<1x8x64xf32> to vector<8x64xf32>
    %28 = vector.shape_cast %25 : vector<8x64xf32> to vector<1x8x64xf32>
    tpu.vector_store %arg7[%c0_20, %c0_21, %c0_22], %28 {strides = array<i32>} : memref<1x8x64xf32, #tpu.memory_space<vmem>>, vector<1x8x64xf32>,
    return
  }
  func.func @transform_0(%arg0: i32) -> (i32, i32) {
    %c0_i32 = arith.constant 0 : i32
    %c0_i32_0 = arith.constant 0 : i32
    %c0_i32_1 = arith.constant 0 : i32
    return %c0_i32, %c0_i32_0 : i32, i32
  }
  func.func @transform_1(%arg0: i32) -> (i32, i32, i32) {
    %c0_i32 = arith.constant 0 : i32
    %c0_i32_0 = arith.constant 0 : i32
    %c0_i32_1 = arith.constant 0 : i32
    return %arg0, %c0_i32, %c0_i32_0 : i32, i32, i32
  }
  func.func @transform_2(%arg0: i32) -> (i32, i32, i32) {
    %c0_i32 = arith.constant 0 : i32
    %c0_i32_0 = arith.constant 0 : i32
    %c0_i32_1 = arith.constant 0 : i32
    return %arg0, %c0_i32, %c0_i32_0 : i32, i32, i32
  }
  func.func @transform_3(%arg0: i32) -> (i32, i32, i32) {
    %c0_i32 = arith.constant 0 : i32
    %c0_i32_0 = arith.constant 0 : i32
    %c0_i32_1 = arith.constant 0 : i32
    return %arg0, %c0_i32, %c0_i32_0 : i32, i32, i32
  }
  func.func @transform_4(%arg0: i32) -> (i32, i32, i32) {
    %c0_i32 = arith.constant 0 : i32
    %c0_i32_0 = arith.constant 0 : i32
    %c0_i32_1 = arith.constant 0 : i32
    return %arg0, %c0_i32, %c0_i32_0 : i32, i32, i32
  }
  func.func @transform_5(%arg0: i32) -> (i32, i32, i32) {
    %c0_i32 = arith.constant 0 : i32
    %c0_i32_0 = arith.constant 0 : i32
    %c0_i32_1 = arith.constant 0 : i32
    return %arg0, %c0_i32, %c0_i32_0 : i32, i32, i32
  }
  func.func @transform_6(%arg0: i32) -> (i32, i32, i32) {
    %c0_i32 = arith.constant 0 : i32
    %c0_i32_0 = arith.constant 0 : i32
    %c0_i32_1 = arith.constant 0 : i32
    return %arg0, %c0_i32, %c0_i32_0 : i32, i32, i32
  }
}

</mosaic_0001>

<bundles_post_ra>
// kernel: tpu_custom_call.1
= control target key start
LH: loop header
LB: loop body
LE: loop exit
PB: predicated region body
PF: predicated region fallthrough
CT: control target
= control target key end

     0   :  { %11 = vsyncpa [#allocation3], 0  ;;  %s1173_s0 = inlined_call_operand.vmem [shape: f32[8,4], index: 0, kind: input, shape index: {}]   ;;  %s1174_s1 = inlined_call_operand.vmem [shape: f32[2,4,128], index: 1, kind: input, shape index: {}]   ;;  %s1175_s2 = inlined_call_operand.vmem [shape: f32[2,128,128], index: 2, kind: input, shape index: {}]   ;;  %s1176_s3 = inlined_call_operand.vmem [shape: f32[2,128,64], index: 3, kind: input, shape index: {}]   ;;  %s1177_s4 = inlined_call_operand.vmem [shape: f32[2,2,128], index: 4, kind: input, shape index: {}]   ;;  %s1178_s5 = inlined_call_operand.vmem [shape: f32[2,1,64], index: 5, kind: input, shape index: {}]   ;;  %s1179_s6 = inlined_call_operand.hbm [shape: f32[2,8,64], index: 6, kind: output, shape index: {}]  }
   0x1   :  { %13 = vsyncpa [#allocation3 + $0x1], 0  ;;  %s980_s21 = smov 0   ;;  %s982_s22 = smov 0  }
   0x2   :  { %s984_s23 = smov 0   ;;  %s986_s24 = smov 0  }
   0x3 LB: > { %s1001_s25 = sadd.s32 4294967295, %s940_s24   ;;  %s708_s26 = sadd.s32 4294967294, %s940_s24   ;;  %s940_s24 = sphi %s986_s24, %s1185_s24   ;;  %s936_s23 = sphi %s984_s23, %s1184_s23   ;;  %s932_s22 = sphi %s982_s22, %s1183_s22   ;;  %s928_s21 = sphi %s980_s21, %s1182_s21  }
   0x4   : > { %s1005_s27 = sadd.s32 1, %s940_s24   ;;  %s177_s28 = sadd.s32 1, %s936_s23 }
   0x5   : > { %s174_s29 = ssub.s32 %s940_s24, %s1005_s27  ;;  %p187_p0 = scmp.ne.s32.totalorder %s936_s23, %s932_s22 }
   0x6   : > { %p175_p1 = scmp.eq.s32.totalorder %s174_s29, 0  ;;  %p188_p2 = scmp.eq.s32.totalorder %s1001_s25, 1 }
   0x7   : > { %p193_p3 = scmp.ne.s32.totalorder %s932_s22, %s928_s21  ;;  %p194_p4 = scmp.eq.s32.totalorder %s708_s26, 1 }
   0x8   : > { %s1016_s30 = scalar_select %p175_p1, %s936_s23, %s177_s28  }
   0x9   : > { %p1018_p5 = por %p188_p2, %p187_p0  ;;  %p1022_p6 = por %p194_p4, %p193_p3 }
   0xa   : > { %p711_p7 = scmp.ge.s32.totalorder %s940_s24, 1  ;;  %p251_p8 = scmp.lt.s32.totalorder %s940_s24, 3 }
   0xc   : > { %p252_p9 = pnand %p711_p7, %p251_p8 }
   0xd   : > { %p297_p10 = scmp.lt.s32.totalorder (!%p252_p9), %s1001_s25, 1  ;;  %s294_s13 = sand.u32 (!%p252_p9), 1, %s932_s22  }
   0xe   : > { %255 = sbr.rel (%p252_p9) target bundleno = 627 (0x273), region = 44  ;;  %s723_s18 = sshll.u32 (!%p252_p9), %s1001_s25, 7 }
  0x13   : > { %v942_v0 = vmov 0.0   ;;  %vm943_vm0 = vmmov 0   ;;  %s1033_s9 = scalar_select %p297_p10, %s1001_s25, 1  ;;  %vm362_vm1 = vcmask 1043456   ;;  %v318_v1 = vld [vmem:[%s1173_s0] sm:$0xff]  ;;  %vm358_vm2 = vcmask 31744  }
  0x14   : > { %764 = vmatprep.subr.mxu0 %v942_v0  ;;  %766 = vmatprep.mubr.msk.f32.mxu0 %vm943_vm0, %v942_v0  ;;  %v354_v32 = vlaneseq  ;;  %vm588_vm3 = vcmask 523264   ;;  %s944_s25 = smov [#allocation2]  }
  0x15   : > { %769 = vmatprep.subr.mxu1 %v942_v0  ;;  %801 = vmatprep.mubr.msk.f32.mxu1 %vm943_vm0, %v942_v0  ;;  %s713_s10 = sshll.u32 %s1033_s9, 2  ;;  %s726_s11 = sshll.u32 %s1033_s9, 7 }
  0x16   : > { %s300_s14 = scalar_lea.vmem %s1174_s1, %s713_s10  ;;  %s1048_s17 = scalar_lea.vmem %s1175_s2, %s726_s11  ;;  %v355_v33 = vshrl.u32 %v354_v32, 7 }
  0x17   : > { %v319_v2 = vld [vmem:[%s300_s14] sm:$0xf]  ;;  %v335_v3 = vld [vmem:[%s1048_s17 + $0x78] sm:$0xff]  ;;  %v334_v4 = vld [vmem:[%s1048_s17 + $0x70] sm:$0xff]  ;;  %s1090_s28 = scalar_lea.vmem %s1176_s3, %s726_s11  ;;  %s718_s29 = sshll.u32 %s1033_s9, 1 }
  0x18   : > { %765 = vmatpush3.msk.msra.mxu0 %vm362_vm1, %v319_v2  ;;  %770 = vmatpush3.msra.mxu1 %v335_v3  ;;  %v333_v5 = vld [vmem:[%s1048_s17 + $0x68] sm:$0xff]  ;;  %v332_v6 = vld [vmem:[%s1048_s17 + $0x60] sm:$0xff]  ;;  %v331_v7 = vld [vmem:[%s1048_s17 + $0x58] sm:$0xff]  ;;  %s314_s12 = scalar_lea.vmem %s1177_s4, %s718_s29  ;;  %v356_v34 = vsub.s32 0, %v355_v33  ;;  %v439_v44 = vsub.s32 1, %v355_v33  ;;  %s712_s14 = sshll.u32 %s294_s13, 3 }
  0x19   : > { %767 = vmatmul.mubr.msk.f32.vlgmr.msra.gmra.mxu0 %vm358_vm2, %v318_v1  ;;  %771 = vmatprep.subr.mxu1 %v942_v0  ;;  %v330_v8 = vld [vmem:[%s1048_s17 + $0x50] sm:$0xff]  ;;  %v329_v9 = vld [vmem:[%s1048_s17 + $0x48] sm:$0xff]  ;;  %v328_v10 = vld [vmem:[%s1048_s17 + $0x40] sm:$0xff]  ;;  %s296_s19 = scalar_lea.vmem [#allocation2], %s712_s14  ;;  %s1138_s29 = scalar_lea.hbm %s1179_s6, %s723_s18 }
  0x1a   : > { %772 = vmatpush3.msra.mxu1 %v334_v4  ;;  %804 = vmatprep.subr.mxu0 %v942_v0  ;;  %v327_v11 = vld [vmem:[%s1048_s17 + $0x38] sm:$0xff]  ;;  %v326_v12 = vld [vmem:[%s1048_s17 + $0x30] sm:$0xff]  ;;  %v325_v13 = vld [vmem:[%s1048_s17 + $0x28] sm:$0xff]  ;;  %s604_s20 = sshll.u32 %s296_s19, 4  ;;  %s591_s10 = scalar_lea.sflag [#allocation3], %s294_s13  ;;  %s605_s20 = int_to_ptr.vmem [resolvable:$true] %s604_s20 }
  0x1b   : > { %773 = vmatprep.subr.mxu1 %v942_v0  ;;  %836 = vmatprep.mubr.msk.f32.mxu0 %vm943_vm0, %v942_v0  ;;  %v324_v14 = vld [vmem:[%s1048_s17 + $0x20] sm:$0xff]  ;;  %v323_v15 = vld [vmem:[%s1048_s17 + $0x18] sm:$0xff]  ;;  %v322_v16 = vld [vmem:[%s1048_s17 + $0x10] sm:$0xff]  ;;  %s880_s11 = scalar_lea.vmem %s605_s20, 128 }
  0x1c   : > { %774 = vmatpush3.msra.mxu1 %v333_v5  ;;  %v321_v17 = vld [vmem:[%s1048_s17 + $0x8] sm:$0xff]  ;;  %v320_v18 = vld [vmem:[%s1048_s17] sm:$0xff]  ;;  %v351_v19 = vld [vmem:[%s1090_s28 + $0x78] sm:$0xff]  ;;  %s317_s17 = scalar_lea.vmem %s1178_s5, %s1033_s9  ;;  %p881_p11 = scmp.ne.s32.totalorder %s605_s20, %s880_s11 }
  0x1d   : > { %775 = vmatprep.subr.mxu1 %v942_v0  ;;  %v350_v20 = vld [vmem:[%s1090_s28 + $0x70] sm:$0xff]  ;;  %805 = vmatpush3.msra.mxu0 %v351_v19  ;;  %v349_v21 = vld [vmem:[%s1090_s28 + $0x68] sm:$0xff]  ;;  %v348_v22 = vld [vmem:[%s1090_s28 + $0x60] sm:$0xff]  ;;  %s884_s9 = sshll.u32 %s944_s25, 4  ;;  %s885_s9 = int_to_ptr.vmem [resolvable:$false] %s884_s9 }
  0x1e   : > { %776 = vmatpush3.msra.mxu1 %v332_v6  ;;  %806 = vmatprep.subr.mxu0 %v942_v0  ;;  %v347_v23 = vld [vmem:[%s1090_s28 + $0x58] sm:$0xff]  ;;  %v346_v24 = vld [vmem:[%s1090_s28 + $0x50] sm:$0xff]  ;;  %v345_v25 = vld [vmem:[%s1090_s28 + $0x48] sm:$0xff]  ;;  %p882_p12 = pnand %p881_p11, %p1018_p5  ;;  %p887_p0 = scmp.lt.s32.totalorder %s605_s20, %s885_s9 }
  0x1f   : > { %777 = vmatprep.subr.mxu1 %v942_v0  ;;  %807 = vmatpush3.msra.mxu0 %v350_v20  ;;  %v344_v26 = vld [vmem:[%s1090_s28 + $0x40] sm:$0xff]  ;;  %v343_v27 = vld [vmem:[%s1090_s28 + $0x38] sm:$0xff]  ;;  %v342_v28 = vld [vmem:[%s1090_s28 + $0x30] sm:$0xff] }
  0x20   : > { %778 = vmatpush3.msra.mxu1 %v331_v7  ;;  %808 = vmatprep.subr.mxu0 %v942_v0  ;;  %v341_v29 = vld [vmem:[%s1090_s28 + $0x28] sm:$0xff]  ;;  %v340_v30 = vld [vmem:[%s1090_s28 + $0x20] sm:$0xff]  ;;  %v339_v31 = vld [vmem:[%s1090_s28 + $0x18] sm:$0xff]  ;;  %p883_p13 = pneg %p882_p12 }
  0x21   : > { %779 = vmatprep.subr.mxu1 %v942_v0  ;;  %809 = vmatpush3.msra.mxu0 %v349_v21  ;;  %v352_v35 = vld [vmem:[%s314_s12] sm:$0x3]  ;;  %v338_v41 = vld [vmem:[%s1090_s28 + $0x10] sm:$0xff]  ;;  %v337_v42 = vld [vmem:[%s1090_s28 + $0x8] sm:$0xff]  ;;  %s886_s12 = scalar_lea.vmem %s885_s9, 256 }
  0x22   : > { %780 = vmatpush3.msra.mxu1 %v330_v8  ;;  %810 = vmatprep.subr.mxu0 %v942_v0  ;;  %v357_v36 = vrot.slane %v352_v35, %v356_v34  ;;  %v336_v43 = vld [vmem:[%s1090_s28] sm:$0xff]  ;;  %v440_v45 = vrot.slane %v352_v35, %v439_v44  ;;  %p888_p1 = scmp.lt.s32.totalorder %s886_s12, %s880_s11 }
  0x23   : > { %781 = vmatprep.subr.mxu1 %v942_v0  ;;  %811 = vmatpush3.msra.mxu0 %v348_v22  ;;  %v721_v50 = vld [vmem:[%s317_s17] ss:$0 sm:$0xff] }
  0x24   : > { %782 = vmatpush3.msra.mxu1 %v329_v9  ;;  %812 = vmatprep.subr.mxu0 %v942_v0  ;;  %p889_p2 = por %p888_p1, %p887_p0 }
  0x25   : > { %783 = vmatprep.subr.mxu1 %v942_v0  ;;  %813 = vmatpush3.msra.mxu0 %v347_v23 }
  0x26   : > { %784 = vmatpush3.msra.mxu1 %v328_v10  ;;  %814 = vmatprep.subr.mxu0 %v942_v0  ;;  %p890_p3 = pnand %p889_p2, %p883_p13 }
  0x27   : > { %785 = vmatprep.subr.mxu1 %v942_v0  ;;  %815 = vmatpush3.msra.mxu0 %v346_v24 }
  0x28   : > { %786 = vmatpush3.msra.mxu1 %v327_v11  ;;  %816 = vmatprep.subr.mxu0 %v942_v0 }
  0x29   : > { %787 = vmatprep.subr.mxu1 %v942_v0  ;;  %817 = vmatpush3.msra.mxu0 %v345_v25 }
  0x2a   : > { %788 = vmatpush3.msra.mxu1 %v326_v12  ;;  %818 = vmatprep.subr.mxu0 %v942_v0 }
  0x2b   : > { %789 = vmatprep.subr.mxu1 %v942_v0  ;;  %819 = vmatpush3.msra.mxu0 %v344_v26 }
  0x2c   : > { %790 = vmatpush3.msra.mxu1 %v325_v13  ;;  %820 = vmatprep.subr.mxu0 %v942_v0 }
  0x2d   : > { %791 = vmatprep.subr.mxu1 %v942_v0  ;;  %821 = vmatpush3.msra.mxu0 %v343_v27 }
  0x2e   : > { %792 = vmatpush3.msra.mxu1 %v324_v14  ;;  %822 = vmatprep.subr.mxu0 %v942_v0 }
  0x2f   : > { %793 = vmatprep.subr.mxu1 %v942_v0  ;;  %823 = vmatpush3.msra.mxu0 %v342_v28 }
  0x30   : > { %794 = vmatpush3.msra.mxu1 %v323_v15  ;;  %824 = vmatprep.subr.mxu0 %v942_v0 }
  0x31   : > { %795 = vmatprep.subr.mxu1 %v942_v0  ;;  %825 = vmatpush3.msra.mxu0 %v341_v29 }
  0x32   : > { %796 = vmatpush3.msra.mxu1 %v322_v16  ;;  %826 = vmatprep.subr.mxu0 %v942_v0 }
  0x33   : > { %797 = vmatprep.subr.mxu1 %v942_v0  ;;  %827 = vmatpush3.msra.mxu0 %v340_v30 }
  0x34   : > { %798 = vmatpush3.msra.mxu1 %v321_v17  ;;  %828 = vmatprep.subr.mxu0 %v942_v0 }
  0x35   : > { %799 = vmatprep.subr.mxu1 %v942_v0  ;;  %829 = vmatpush3.msra.mxu0 %v339_v31 }
  0x36   : > { %800 = vmatpush3.msra.mxu1 %v320_v18  ;;  %830 = vmatprep.subr.mxu0 %v942_v0 }
  0x37   : > { %831 = vmatpush3.msra.mxu0 %v338_v41 }
  0x38   : > { %832 = vmatprep.subr.mxu0 %v942_v0 }
  0x39   : > { %833 = vmatpush3.msra.mxu0 %v337_v42 }
  0x3a   : > { %834 = vmatprep.subr.mxu0 %v942_v0 }
  0x3b   : > { %835 = vmatpush3.msra.mxu0 %v336_v43 }
  0xd9   : > { %v432_v37 = vpop.f32.mrf.mxu0 }
  0xda   : > { %v433_v38 = vadd.f32 %v432_v37, %v357_v36 }
  0xdb   : > { %v768_v39 = vpop.f32.mrf.mxu0 }
  0xdc   : > { %v436_v40 = vmax.f32 %v433_v38, 0.0 }
  0xde   : > { %802 = vmatmul.mubr.f32.vlgmr.msra.gmra.mxu1 %v436_v40 }
 0x19e   : > { %v507_v46 = vpop.f32.mrf.mxu1 }
 0x19f   : > { %v508_v47 = vadd.f32 %v507_v46, %v440_v45 }
 0x1a0   : > { %v803_v48 = vpop.f32.mrf.mxu1 }
 0x1a1   : > { %v511_v49 = vmax.f32 %v508_v47, 0.0 }
 0x1a3   : > { %837 = vmatmul.mubr.f32.vlgmr.msra.gmra.mxu0 %v511_v49 }
 0x263   : > { %v584_v51 = vpop.f32.mrf.mxu0 }
 0x264   : > { %v585_v52 = vadd.f32 %v721_v50, %v584_v51 }
 0x265   : > { %v838_v53 = vpop.f32.mrf.mxu0 }
 0x266   : > { %589 = vst.msk [vmem:[%s296_s19] sm:$0xff] %vm588_vm3, %v585_v52 }
 0x267   : > { %893 = shalt.err (!%p890_p3)
}
 0x268   : > { %s894_s14 = scalar_lea.hbm %s1138_s29, 128  ;;  %s898_s16 = scalar_lea.hbm %s1179_s6, 256 }
 0x269   : > { %p895_p4 = scmp.ne.s32.totalorder %s1138_s29, %s894_s14  ;;  %p899_p9 = scmp.lt.s32.totalorder %s1138_s29, %s1179_s6 }
 0x26a   : > { %p900_p10 = scmp.lt.s32.totalorder %s898_s16, %s894_s14 }
 0x26b   : > { %p896_p7 = pnand %p895_p4, %p1018_p5 }
 0x26c   : > { %p901_p11 = por %p900_p10, %p899_p9 }
 0x26d   : > { %p897_p8 = pneg %p896_p7 }
 0x26f   : > { %p902_p12 = pnand %p901_p11, %p897_p8 }
 0x271   : > { %905 = shalt.err (!%p902_p12)
}
 0x272   : > { %839 = dma.vmem_to_hbm [thread:$0]  (%p1018_p5), %s605_s20, 128, %s1138_s29, %s591_s10  }
 0x273 PF: > { %p845_p13 = scmp.ge.s32.totalorder %s940_s24, 2  ;;  %s616_s19 = sand.u32 1, %s928_s21  }
 0x274   : > { %s617_s26 = scalar_lea.sflag [#allocation3], %s616_s19 }
 0x275   : > { %p842_p0 = pnand %p845_p13, %p1022_p6 }
 0x277   : > { %p843_p1 = pneg %p842_p0 }
 0x279   : > { %923 = dma.done.wait (%p843_p1), %s617_s26, 128  }
 0x27a   : > { %925 = vsyncadd (%p843_p1), %s617_s26, 4294967168  ;;  %p16_p2 = scmp.ge.s32.totalorder %s1005_s27, 4   ;;  %s1182_s21 = smov %s932_s22 }
 0x27b   : > { %s1183_s22 = smov %s936_s23  ;;  %s1184_s23 = smov %s1016_s30 }
 0x27c   : > { %s1185_s24 = smov %s1005_s27  ;;  %18 = sbr.rel (!%p16_p2) target bundleno = 3 (0x3), region = 91 }
 0x281   :  { %622 = vsyncpa [#allocation3], 1 }
 0x282   :  { %624 = vsyncpa [#allocation3 + $0x1], 1 }

</bundles_post_ra>
